<compile_context>
chip_gen: v7x
topology: tpu7x:2x2x1
jax: 0.10.0
libtpu: 0.0.40
codegen_flags: <defaults>
</compile_context>

<pallas_src>
import jax
import jax.numpy as jnp
from jax import lax
from jax.experimental import pallas as pl
from jax.experimental.pallas import tpu as pltpu


def _round_up(x, m):
    return (x + m - 1) // m * m


def _padded_f32_bytes(rows, cols):
    # VMEM footprint of a 2-D f32 array after (8, 128) tiling.
    return _round_up(max(rows, 1), 8) * _round_up(max(cols, 1), 128) * 4


def _vmem_capacity_bytes():
    try:
        info = pltpu.get_tpu_info()
        cap = getattr(info, "vmem_capacity_bytes", None)
        if cap:
            return int(cap)
    except Exception:
        pass
    return 64 << 20  # conservative default: v7x per-TensorCore VMEM


def _choose_tile(n):
    """Rows per grid step; keep >=2 grid steps for megacore / pipelining."""
    if n >= 2048:
        tm = 512
    elif n >= 512:
        tm = 256
    else:
        tm = max(8, _round_up(-(-n // 2), 8))
    num_tiles = -(-n // tm)
    return tm, num_tiles


def _make_onehot_kernel(tm, r_pad):
    """One multi-hot MXU matmul per tile -> concatenated embedding row block."""

    def kernel(idx_ref, tab_ref, out_ref):
        # idx_ref: (TM, 3) int32, columns already offset into the combined
        #          table's row space (word / V+pos1 / V+P+pos2) and clipped.
        # tab_ref: (R_pad, Dtot) block-diagonal combined table, VMEM resident.
        iota = lax.broadcasted_iota(jnp.int32, (tm, r_pad), 1)
        idx = idx_ref[...]
        hot = ((idx[:, 0:1] == iota) |
               (idx[:, 1:2] == iota) |
               (idx[:, 2:3] == iota)).astype(jnp.float32)
        out_ref[...] = jnp.dot(hot, tab_ref[...],
                               preferred_element_type=jnp.float32)

    return kernel


def _make_loop_kernel(tm, dw, dtot, p2_pad, unroll):
    """Large-vocab fallback: word via resident-table dynamic-slice gather,
    pos1/pos2 via one tiny one-hot MXU matmul."""

    def kernel(widx_s,      # (N_pad,) int32 word indices (SMEM, scalar prefetch)
               pidx_ref,    # (TM, 2) int32 pos indices remapped into [0, 2P)
               wtab_ref,    # (V, Dw) word table, VMEM resident
               ptab_ref,    # (P2_pad, 2*Dp) combined pos table, VMEM resident
               out_ref):    # (TM, Dtot)
        # pos1/pos2 gather: one MXU matmul + one bulk store.
        iota = lax.broadcasted_iota(jnp.int32, (tm, p2_pad), 1)
        pid = pidx_ref[...]
        hot = ((pid[:, 0:1] == iota) | (pid[:, 1:2] == iota)).astype(jnp.float32)
        out_ref[:, dw:dtot] = jnp.dot(hot, ptab_ref[...],
                                      preferred_element_type=jnp.float32)

        # word gather: per-row dynamic sublane slices from the resident table,
        # unrolled so the scheduler packs index reads with the copies.
        base = pl.program_id(0) * tm

        def body(r, carry):
            w = widx_s[base + r]
            out_ref[pl.ds(r, 1), 0:dw] = wtab_ref[pl.ds(w, 1), :]
            return carry

        lax.fori_loop(0, tm, body, 0, unroll=unroll)

    return kernel


def embedding_forward(word, pos1, pos2, word_vec_mat, pos1_table, pos2_table,
                      *, gather="auto", validate=False, max_onehot_rows=4096):
    """Equivalent of Embedding.forward({'word': word, 'pos1': pos1, 'pos2': pos2})."""
    B, L = word.shape
    V, Dw = word_vec_mat.shape
    P, Dp = pos1_table.shape
    assert pos2_table.shape == (P, Dp)
    Dtot = Dw + 2 * Dp

    if validate:
        # TODO(synk): host-syncing bounds checks mirroring the PyTorch ValueError;
        # they cannot run under jax.jit, so they are opt-in. The hot path clips
        # indices instead (never reads out of bounds, but does not raise).
        if int(jnp.max(word)) >= V:
            raise ValueError(f"Word index out of range: {int(jnp.max(word))} >= {V}")
        if int(jnp.max(pos1)) >= P:
            raise ValueError(f"Position 1 index out of range: {int(jnp.max(pos1))} >= {P}")
        if int(jnp.max(pos2)) >= P:
            raise ValueError(f"Position 2 index out of range: {int(jnp.max(pos2))} >= {P}")

    N = B * L
    TM, num_tiles = _choose_tile(N)
    N_pad = TM * num_tiles

    # ---- generation-aware residency / path selection -----------------------
    cap = _vmem_capacity_bytes()
    budget = cap - (16 << 20)          # headroom for compiler scratch

    R = V + 2 * P
    R_pad = _round_up(R, 128)
    P2 = 2 * P
    P2_pad = _round_up(P2, 8)

    est_onehot = (2 * _padded_f32_bytes(R_pad, Dtot)    # combined table (dbl-buffered)
                  + 2 * _padded_f32_bytes(TM, 3)        # index blocks
                  + 2 * _padded_f32_bytes(TM, Dtot)     # output blocks
                  + 2 * _padded_f32_bytes(TM, R_pad))   # one-hot + iota temporaries
    est_loop = (2 * _padded_f32_bytes(V, Dw)
                + 2 * _padded_f32_bytes(P2_pad, 2 * Dp)
                + 2 * _padded_f32_bytes(TM, 2)
                + 2 * _padded_f32_bytes(TM, Dtot)
                + 2 * _padded_f32_bytes(TM, P2_pad))

    if gather == "auto":
        gather = "onehot" if (R_pad <= max_onehot_rows and est_onehot <= budget) \
            else "loop"
    # TODO(synk): vocabularies whose lane-padded table exceeds VMEM need an HBM
    # row-DMA streaming path (chunked waits, DMA straight into the output tile);
    # out of scope here — the resident "loop" path is used best-effort instead.

    est = est_onehot if gather == "onehot" else est_loop
    vmem_limit = int(min(max(cap - (4 << 20), 16 << 20),
                         max(32 << 20, 2 * est)))
    compiler_params = pltpu.CompilerParams(
        dimension_semantics=("parallel",),
        vmem_limit_bytes=vmem_limit)

    # ---- index prep (clip => never out of bounds) ---------------------------
    wf = jnp.clip(word.reshape(-1).astype(jnp.int32), 0, V - 1)
    p1f = jnp.clip(pos1.reshape(-1).astype(jnp.int32), 0, P - 1)
    p2f = jnp.clip(pos2.reshape(-1).astype(jnp.int32), 0, P - 1)

    out_shape = jax.ShapeDtypeStruct((N_pad, Dtot), jnp.float32)

    if gather == "onehot":
        # Combined block-diagonal table: one matmul yields cat([w, p1, p2], -1).
        tab = jnp.zeros((R_pad, Dtot), jnp.float32)
        tab = tab.at[0:V, 0:Dw].set(word_vec_mat.astype(jnp.float32))
        tab = tab.at[V:V + P, Dw:Dw + Dp].set(pos1_table.astype(jnp.float32))
        tab = tab.at[V + P:V + 2 * P, Dw + Dp:Dtot].set(
            pos2_table.astype(jnp.float32))

        idx = jnp.stack([wf, p1f + V, p2f + V + P], axis=1)         # (N, 3)
        if N_pad > N:
            pad = jnp.broadcast_to(jnp.array([[0, V, V + P]], jnp.int32),
                                   (N_pad - N, 3))
            idx = jnp.concatenate([idx, pad], axis=0)

        kernel = _make_onehot_kernel(TM, R_pad)
        grid_spec = pltpu.PrefetchScalarGridSpec(
            num_scalar_prefetch=0,
            grid=(num_tiles,),
            in_specs=[
                pl.BlockSpec((TM, 3), lambda i: (i, 0)),
                pl.BlockSpec((R_pad, Dtot), lambda i: (0, 0)),   # VMEM resident
            ],
            out_specs=pl.BlockSpec((TM, Dtot), lambda i: (i, 0)),
        )
        out = pl.pallas_call(kernel, out_shape=out_shape, grid_spec=grid_spec,
                             compiler_params=compiler_params)(idx, tab)
    else:
        # Fallback: word table resident + dynamic-slice gather; pos via one-hot.
        ptab = jnp.zeros((P2_pad, 2 * Dp), jnp.float32)
        ptab = ptab.at[0:P, 0:Dp].set(pos1_table.astype(jnp.float32))
        ptab = ptab.at[P:2 * P, Dp:2 * Dp].set(pos2_table.astype(jnp.float32))

        widx = jnp.pad(wf, (0, N_pad - N))
        pidx = jnp.stack([p1f, p2f + P], axis=1)                    # (N, 2)
        if N_pad > N:
            pad = jnp.broadcast_to(jnp.array([[0, P]], jnp.int32), (N_pad - N, 2))
            pidx = jnp.concatenate([pidx, pad], axis=0)

        kernel = _make_loop_kernel(TM, Dw, Dtot, P2_pad, unroll=min(8, TM))
        grid_spec = pltpu.PrefetchScalarGridSpec(
            num_scalar_prefetch=1,
            grid=(num_tiles,),
            in_specs=[
                pl.BlockSpec((TM, 2), lambda i, w: (i, 0)),
                pl.BlockSpec((V, Dw), lambda i, w: (0, 0)),          # word table resident
                pl.BlockSpec((P2_pad, 2 * Dp), lambda i, w: (0, 0)),  # pos table resident
            ],
            out_specs=pl.BlockSpec((TM, Dtot), lambda i, w: (i, 0)),
        )
        out = pl.pallas_call(kernel, out_shape=out_shape, grid_spec=grid_spec,
                             compiler_params=compiler_params)(
            widx, pidx, word_vec_mat.astype(jnp.float32), ptab)

    if N_pad != N:
        out = out[:N]
    return out.reshape(B, L, Dtot)


def make_params(key, vocab_size, max_length, word_embedding_dim=50,
                pos_embedding_dim=5):
    """Deterministic parameter construction mirroring Embedding.__init__ shapes."""
    k_word, k_p1, k_p2 = jax.random.split(key, 3)
    # word embedding weight is copied verbatim from word_vec_mat in the torch module
    word_vec_mat = jax.random.normal(
        k_word, (vocab_size, word_embedding_dim), dtype=jnp.float32)
    # pos embeddings: nn.Embedding(2*max_length, pos_dim, padding_idx=0)
    # -> row 0 is zero after construction.
    # TODO(synk): padding_idx only zeroes the row at init; gradient masking for
    # training is out of scope for this forward-only kernel.
    pos1_table = jax.random.normal(
        k_p1, (2 * max_length, pos_embedding_dim), dtype=jnp.float32)
    pos2_table = jax.random.normal(
        k_p2, (2 * max_length, pos_embedding_dim), dtype=jnp.float32)
    pos1_table = pos1_table.at[0].set(0.0)
    pos2_table = pos2_table.at[0].set(0.0)
    return word_vec_mat, pos1_table, pos2_table


if __name__ == "__main__":
    key = jax.random.PRNGKey(0)
    k_params, k_w, k_p1, k_p2 = jax.random.split(key, 4)

    # Small synthetic shapes consistent with the module.
    B, L = 2, 8                 # batch, sequence length (== max_length)
    max_length = L
    vocab_size = 100            # word_vec_mat.shape[0]
    Dw, Dp = 50, 5

    word_vec_mat, pos1_table, pos2_table = make_params(
        k_params, vocab_size, max_length, Dw, Dp)

    word = jax.random.randint(k_w, (B, L), 0, vocab_size, dtype=jnp.int32)
    pos1 = jax.random.randint(k_p1, (B, L), 0, 2 * max_length, dtype=jnp.int32)
    pos2 = jax.random.randint(k_p2, (B, L), 0, 2 * max_length, dtype=jnp.int32)

    # Pure-JAX reference (same semantics as the PyTorch forward).
    ref = jnp.concatenate(
        [word_vec_mat[word], pos1_table[pos1], pos2_table[pos2]], axis=2)

    fwd = jax.jit(embedding_forward,
                  static_argnames=("gather", "validate", "max_onehot_rows"))

    # Primary (auto -> one-hot MXU) path.
    out = jax.block_until_ready(
        fwd(word, pos1, pos2, word_vec_mat, pos1_table, pos2_table))
    assert out.shape == (B, L, Dw + 2 * Dp), out.shape
    assert jnp.allclose(out, ref, atol=1e-5, rtol=1e-5), "one-hot path mismatch"

    # Large-vocab fallback path (forced) — verified on the same inputs.
    out_loop = jax.block_until_ready(
        fwd(word, pos1, pos2, word_vec_mat, pos1_table, pos2_table,
            gather="loop"))
    assert jnp.allclose(out_loop, ref, atol=1e-5, rtol=1e-5), "loop path mismatch"

    print("KERNEL_OK")
</pallas_src>

<mosaic_0001>
module attributes {stable_mosaic.version = 11 : i64} {
  func.func @kernel(%arg0: i32, %arg1: memref<8x3xi32, #tpu.memory_space<vmem>>, %arg2: memref<256x60xf32, #tpu.memory_space<vmem>>, %arg3: memref<8x60xf32, #tpu.memory_space<vmem>>) attributes {dimension_semantics = [#tpu.dimension_semantics<parallel>], iteration_bounds = array<i64: 2>, scalar_prefetch = 0 : i64, scratch_operands = 0 : i64, tpu.core_type = #tpu.core_type<tc>, window_params = [{transform_indices = @transform_0, window_bounds = array<i64: 8, 3>}, {pipeline_mode = #tpu.pipeline_mode<synchronous>, transform_indices = @transform_1, window_bounds = array<i64: 256, 60>}, {transform_indices = @transform_2, window_bounds = array<i64: 8, 60>}]} {
    %0 = tpu.iota {dimensions = array<i32: 1>} : vector<8x256xi32>
    %c0 = arith.constant 0 : index
    %c0_0 = arith.constant 0 : index
    %1 = vector.load %arg1[%c0, %c0_0] : memref<8x3xi32, #tpu.memory_space<vmem>>, vector<8x3xi32>
    %2 = vector.extract_strided_slice %1 {offsets = [0, 0], sizes = [8, 1], strides = [1, 1]} : vector<8x3xi32> to vector<8x1xi32>
    %3 = vector.broadcast %2 : vector<8x1xi32> to vector<8x256xi32>
    %4 = arith.cmpi eq, %3, %0 : vector<8x256xi32>
    %5 = vector.extract_strided_slice %1 {offsets = [0, 1], sizes = [8, 1], strides = [1, 1]} : vector<8x3xi32> to vector<8x1xi32>
    %6 = vector.broadcast %5 : vector<8x1xi32> to vector<8x256xi32>
    %7 = arith.cmpi eq, %6, %0 : vector<8x256xi32>
    %8 = arith.ori %4, %7 : vector<8x256xi1>
    %9 = vector.extract_strided_slice %1 {offsets = [0, 2], sizes = [8, 1], strides = [1, 1]} : vector<8x3xi32> to vector<8x1xi32>
    %10 = vector.broadcast %9 : vector<8x1xi32> to vector<8x256xi32>
    %11 = arith.cmpi eq, %10, %0 : vector<8x256xi32>
    %12 = arith.ori %8, %11 : vector<8x256xi1>
    %13 = arith.extui %12 : vector<8x256xi1> to vector<8x256xi32>
    %14 = arith.sitofp %13 : vector<8x256xi32> to vector<8x256xf32>
    %c0_1 = arith.constant 0 : index
    %c0_2 = arith.constant 0 : index
    %15 = vector.load %arg2[%c0_1, %c0_2] : memref<256x60xf32, #tpu.memory_space<vmem>>, vector<256x60xf32>
    %cst = arith.constant dense<0.000000e+00> : vector<8x60xf32>
    %16 = tpu.matmul %14, %15, %cst {dimension_numbers = #tpu.dot_dimension_numbers<[1], [0], [0], [1], [0, 0, 1, 1], [], []>} : vector<8x256xf32>, vector<256x60xf32>, vector<8x60xf32> -> vector<8x60xf32>
    %c0_3 = arith.constant 0 : index
    %c0_4 = arith.constant 0 : index
    %17 = vector.load %arg3[%c0_3, %c0_4] : memref<8x60xf32, #tpu.memory_space<vmem>>, vector<8x60xf32>
    tpu.vector_store %arg3[%c0_3, %c0_4], %16 {strides = array<i32>} : memref<8x60xf32, #tpu.memory_space<vmem>>, vector<8x60xf32>,
    return
  }
  func.func @transform_0(%arg0: i32) -> (i32, i32) {
    %c0_i32 = arith.constant 0 : i32
    %c0_i32_0 = arith.constant 0 : i32
    return %arg0, %c0_i32 : i32, i32
  }
  func.func @transform_1(%arg0: i32) -> (i32, i32) {
    %c0_i32 = arith.constant 0 : i32
    %c0_i32_0 = arith.constant 0 : i32
    %c0_i32_1 = arith.constant 0 : i32
    return %c0_i32, %c0_i32_0 : i32, i32
  }
  func.func @transform_2(%arg0: i32) -> (i32, i32) {
    %c0_i32 = arith.constant 0 : i32
    %c0_i32_0 = arith.constant 0 : i32
    return %arg0, %c0_i32 : i32, i32
  }
}

</mosaic_0001>

<bundles_post_ra>
// kernel: embedding_forward.1
= control target key start
LH: loop header
LB: loop body
LE: loop exit
PB: predicated region body
PF: predicated region fallthrough
CT: control target
= control target key end

     0   :  { %7 = vsyncpa [#allocation3], 0  ;;  %s751_s0 = inlined_call_operand.vmem [shape: s32[16,3], index: 0, kind: input, shape index: {}]   ;;  %s752_s1 = inlined_call_operand.vmem [shape: f32[256,60], index: 1, kind: input, shape index: {}]   ;;  %s753_s2 = inlined_call_operand.hbm [shape: f32[16,60], index: 2, kind: output, shape index: {}]  }
   0x1   :  { %9 = vsyncpa [#allocation3 + $0x1], 0  ;;  %s555_s9 = smov 0   ;;  %s557_s10 = smov 0  }
   0x2   :  { %s559_s11 = smov 0   ;;  %s561_s12 = smov 0  }
   0x3 LB: > { %s576_s13 = sadd.s32 4294967295, %s533_s12   ;;  %s343_s14 = sadd.s32 4294967294, %s533_s12   ;;  %s533_s12 = sphi %s561_s12, %s759_s12   ;;  %s529_s11 = sphi %s559_s11, %s758_s11   ;;  %s525_s10 = sphi %s557_s10, %s757_s10   ;;  %s521_s9 = sphi %s555_s9, %s756_s9  }
   0x4   : > { %s580_s15 = sadd.s32 1, %s533_s12   ;;  %s69_s16 = sadd.s32 1, %s529_s11 }
   0x5   : > { %s66_s17 = ssub.s32 %s533_s12, %s580_s15  ;;  %p79_p0 = scmp.ne.s32.totalorder %s529_s11, %s525_s10 }
   0x6   : > { %p67_p1 = scmp.eq.s32.totalorder %s66_s17, 0  ;;  %p80_p2 = scmp.eq.s32.totalorder %s576_s13, 1 }
   0x7   : > { %p85_p3 = scmp.ne.s32.totalorder %s525_s10, %s521_s9  ;;  %p86_p4 = scmp.eq.s32.totalorder %s343_s14, 1 }
   0x8   : > { %s591_s18 = scalar_select %p67_p1, %s529_s11, %s69_s16  }
   0x9   : > { %p593_p5 = por %p80_p2, %p79_p0  ;;  %p597_p6 = por %p86_p4, %p85_p3 }
   0xa   : > { %p346_p7 = scmp.ge.s32.totalorder %s533_s12, 1  ;;  %p114_p8 = scmp.lt.s32.totalorder %s533_s12, 3 }
   0xc   : > { %p115_p9 = pnand %p346_p7, %p114_p8 }
   0xd   : > { %p135_p10 = scmp.lt.s32.totalorder (!%p115_p9), %s576_s13, 1  ;;  %v182_v0 = vld [vmem:[%s752_s1 + $0x80] sm:$0xff] (!%p115_p9)  ;;  %v183_v1 = vld [vmem:[%s752_s1 + $0x88] sm:$0xff] (!%p115_p9)  ;;  %v535_v2 = vmov (!%p115_p9), 0   ;;  %v536_v3 = vmov (!%p115_p9), 2   ;;  %v184_v7 = vld [vmem:[%s752_s1 + $0x90] sm:$0xff] (!%p115_p9)  ;;  %v139_v52 = vlaneseq (!%p115_p9) }
   0xe   : > { %118 = sbr.rel (%p115_p9) target bundleno = 394 (0x18a), region = 28  ;;  %467 = vset.pattern.permute.xlu0 (!%p115_p9), %v535_v2  ;;  %469 = vset.pattern.permute.xlu1 (!%p115_p9), %v536_v3  ;;  %v392_v4 = vpack.c.bf16 (!%p115_p9), %v183_v1, %v182_v0  ;;  %v166_v5 = vld [vmem:[%s752_s1] sm:$0xff] (!%p115_p9)  ;;  %v167_v6 = vld [vmem:[%s752_s1 + $0x8] sm:$0xff] (!%p115_p9)  ;;  %v185_v9 = vld [vmem:[%s752_s1 + $0x98] sm:$0xff] (!%p115_p9)  ;;  %v537_v28 = vmov (!%p115_p9), 1   ;;  %v538_v58 = vmov (!%p115_p9), 1.0  }
   0xf   : > { %v394_v8 = vpack.c.bf16 (!%p115_p9), %v167_v6, %v166_v5  ;;  %v168_v10 = vld [vmem:[%s752_s1 + $0x10] sm:$0xff] (!%p115_p9)  ;;  %v169_v11 = vld [vmem:[%s752_s1 + $0x18] sm:$0xff] (!%p115_p9)  ;;  %v396_v12 = vpack.c.bf16 (!%p115_p9), %v185_v9, %v184_v7  ;;  %v186_v13 = vld [vmem:[%s752_s1 + $0xa0] sm:$0xff] (!%p115_p9)  ;;  %v140_v53 = vand.u32 (!%p115_p9), 127, %v139_v52  ;;  %s354_s7 = sshll.u32 (!%p115_p9), %s576_s13, 7  ;;  %vm268_vm10 = vcmask (!%p115_p9), 490496  }
  0x10   : > { %393 = vmatprep.subr.bf16.mxu0 (!%p115_p9), %v392_v4  ;;  %v187_v14 = vld [vmem:[%s752_s1 + $0xa8] sm:$0xff] (!%p115_p9)  ;;  %v398_v15 = vpack.c.bf16 (!%p115_p9), %v169_v11, %v168_v10  ;;  %v170_v17 = vld [vmem:[%s752_s1 + $0x20] sm:$0xff] (!%p115_p9)  ;;  %v188_v20 = vld [vmem:[%s752_s1 + $0xb0] sm:$0xff] (!%p115_p9)  ;;  %s709_s21 = scalar_lea.hbm (!%p115_p9), %s753_s2, %s354_s7 }
  0x11   : > { %395 = vmatpush3.bf16.msra.mxu0 (!%p115_p9), %v394_v8  ;;  %v400_v16 = vpack.c.bf16 (!%p115_p9), %v187_v14, %v186_v13  ;;  %v171_v18 = vld [vmem:[%s752_s1 + $0x28] sm:$0xff] (!%p115_p9)  ;;  %v189_v21 = vld [vmem:[%s752_s1 + $0xb8] sm:$0xff] (!%p115_p9)  ;;  %v172_v24 = vld [vmem:[%s752_s1 + $0x30] sm:$0xff] (!%p115_p9)  ;;  %v141_v56 = vadd.s32 (!%p115_p9), 128, %v140_v53 }
  0x12   : > { %397 = vmatprep.subr.bf16.mxu0 (!%p115_p9), %v396_v12  ;;  %v402_v22 = vpack.c.bf16 (!%p115_p9), %v171_v18, %v170_v17  ;;  %v404_v23 = vpack.c.bf16 (!%p115_p9), %v189_v21, %v188_v20  ;;  %v173_v25 = vld [vmem:[%s752_s1 + $0x38] sm:$0xff] (!%p115_p9)  ;;  %v190_v26 = vld [vmem:[%s752_s1 + $0xc0] sm:$0xff] (!%p115_p9)  ;;  %v191_v27 = vld [vmem:[%s752_s1 + $0xc8] sm:$0xff] (!%p115_p9) }
  0x13   : > { %v406_v29 = vpack.c.bf16 (!%p115_p9), %v173_v25, %v172_v24  ;;  %v408_v30 = vpack.c.bf16 (!%p115_p9), %v191_v27, %v190_v26  ;;  %v174_v31 = vld [vmem:[%s752_s1 + $0x40] sm:$0xff] (!%p115_p9)  ;;  %v175_v32 = vld [vmem:[%s752_s1 + $0x48] sm:$0xff] (!%p115_p9)  ;;  %v192_v33 = vld [vmem:[%s752_s1 + $0xd0] sm:$0xff] (!%p115_p9) }
  0x14   : > { %v193_v34 = vld [vmem:[%s752_s1 + $0xd8] sm:$0xff] (!%p115_p9)  ;;  %v410_v35 = vpack.c.bf16 (!%p115_p9), %v175_v32, %v174_v31  ;;  %v176_v37 = vld [vmem:[%s752_s1 + $0x50] sm:$0xff] (!%p115_p9)  ;;  %v194_v39 = vld [vmem:[%s752_s1 + $0xe0] sm:$0xff] (!%p115_p9) }
  0x15   : > { %s136_s3 = scalar_select %p135_p10, %s576_s13, 1  ;;  %399 = vmatpush3.bf16.msra.mxu0 %v398_v15  ;;  %v412_v36 = vpack.c.bf16 %v193_v34, %v192_v33  ;;  %v177_v38 = vld [vmem:[%s752_s1 + $0x58] sm:$0xff]  ;;  %v195_v40 = vld [vmem:[%s752_s1 + $0xe8] sm:$0xff]  ;;  %v178_v43 = vld [vmem:[%s752_s1 + $0x60] sm:$0xff] }
  0x16   : > { %401 = vmatprep.subr.bf16.mxu0 %v400_v16  ;;  %v414_v41 = vpack.c.bf16 %v177_v38, %v176_v37  ;;  %v416_v42 = vpack.c.bf16 %v195_v40, %v194_v39  ;;  %v179_v44 = vld [vmem:[%s752_s1 + $0x68] sm:$0xff]  ;;  %v196_v45 = vld [vmem:[%s752_s1 + $0xf0] sm:$0xff]  ;;  %v197_v46 = vld [vmem:[%s752_s1 + $0xf8] sm:$0xff]  ;;  %s539_s13 = smov [#allocation2]  }
  0x17   : > { %s348_s23 = sshll.u32 %s136_s3, 3  ;;  %v418_v47 = vpack.c.bf16 %v179_v44, %v178_v43  ;;  %v420_v48 = vpack.c.bf16 %v197_v46, %v196_v45  ;;  %v180_v49 = vld [vmem:[%s752_s1 + $0x70] sm:$0xff]  ;;  %v181_v50 = vld [vmem:[%s752_s1 + $0x78] sm:$0xff]  ;;  %s132_s3 = sand.u32 1, %s525_s10  }
  0x18   : > { %s138_s26 = scalar_lea.vmem %s751_s0, %s348_s23  ;;  %v422_v51 = vpack.c.bf16 %v181_v50, %v180_v49  ;;  %s347_s6 = sshll.u32 %s132_s3, 3 }
  0x19   : > { %v142_v19 = vld [vmem:[%s138_s26] sm:$0xff]  ;;  %403 = vmatpush3.bf16.msra.mxu0 %v402_v22  ;;  %s134_s8 = scalar_lea.vmem [#allocation2], %s347_s6  ;;  %s271_s22 = scalar_lea.sflag [#allocation3], %s132_s3 }
  0x1a   : > { %144 = vperm.xlu0 %467, %v142_v19   ;;  %156 = vperm.xlu1 %469, %v142_v19   ;;  %s284_s14 = sshll.u32 %s134_s8, 4  ;;  %s475_s24 = sshll.u32 %s539_s13, 4  ;;  %s711_s14 = int_to_ptr.vmem [resolvable:$true] %s284_s14  ;;  %s476_s24 = int_to_ptr.vmem [resolvable:$false] %s475_s24 }
  0x1b   : > { %405 = vmatprep.subr.bf16.mxu0 %v404_v23  ;;  %s471_s23 = scalar_lea.vmem %s711_s14, 128  ;;  %s477_s25 = scalar_lea.vmem %s476_s24, 256 }
  0x1c   : > { %p472_p11 = scmp.ne.s32.totalorder %s711_s14, %s471_s23  ;;  %p478_p0 = scmp.lt.s32.totalorder %s711_s14, %s476_s24 }
  0x1d   : > { %407 = vmatpush3.bf16.msra.mxu0 %v406_v29  ;;  %p479_p1 = scmp.lt.s32.totalorder %s477_s25, %s471_s23 }
  0x1e   : > { %468 = vset.pattern.permute.xlu0 %v537_v28  ;;  %409 = vmatprep.subr.bf16.mxu0 %v408_v30  ;;  %p473_p12 = pnand %p472_p11, %p593_p5 }
  0x1f   : > { %149 = vperm.xlu0 %468, %v142_v19   ;;  %p480_p2 = por %p479_p1, %p478_p0 }
  0x20   : > { %p474_p13 = pneg %p473_p12 }
  0x21   : > { %411 = vmatpush3.bf16.msra.mxu0 %v410_v35 }
  0x22   : > { %413 = vmatprep.subr.bf16.mxu0 %v412_v36  ;;  %p481_p3 = pnand %p480_p2, %p474_p13 }
  0x23   : > { %470 = vset.pattern.permute.xlu0 %v536_v3 }
  0x25   : > { %415 = vmatpush3.bf16.msra.mxu0 %v414_v41 }
  0x26   : > { %417 = vmatprep.subr.bf16.mxu0 %v416_v42 }
  0x29   : > { %419 = vmatpush3.bf16.msra.mxu0 %v418_v47 }
  0x2a   : > { %421 = vmatprep.subr.bf16.mxu0 %v420_v48 }
  0x2d   : > { %423 = vmatpush3.bf16.msra.mxu0 %v422_v51 }
  0x99   : > { %v145_v54 = vpop.permute.xlu0 %144  ;;  %v157_v55 = vpop.permute.xlu1 %156 }
  0x9a   : > { %vm158_vm0 = vcmp.eq.s32.totalorder %v157_v55, %v140_v53  ;;  %vm146_vm1 = vcmp.eq.s32.totalorder %v145_v54, %v140_v53  ;;  %vm159_vm5 = vcmp.eq.s32.totalorder %v157_v55, %v141_v56  ;;  %vm147_vm6 = vcmp.eq.s32.totalorder %v145_v54, %v141_v56 }
  0x9e   : > { %v150_v57 = vpop.permute.xlu0 %149 }
  0x9f   : > { %vm151_vm2 = vcmp.eq.s32.totalorder %v150_v57, %v140_v53  ;;  %vm152_vm3 = vcmp.eq.s32.totalorder %v150_v57, %v141_v56 }
  0xa0   : > { %vm153_vm4 = vmor %vm146_vm1, %vm151_vm2 }
  0xa1   : > { %vm160_vm7 = vmor %vm153_vm4, %vm158_vm0 }
  0xa2   : > { %vm154_vm8 = vmor %vm147_vm6, %vm152_vm3 }
  0xa3   : > { %vm161_vm9 = vmor %vm154_vm8, %vm159_vm5 }
  0xa4   : > { %351 = vmatprep.mubr.msk.f32.mxu0 %vm161_vm9, %v538_v58 }
  0xa5   : > { %352 = vmatmul.mubr.msk.f32.vlgmr.msra.gmra.mrb[0].mxu0 %vm160_vm7, %v538_v58 }
 0x178   : > { %v389_v59 = vpop.f32.mrb[0].mxu0 }
 0x179   : > { %v390_v60 = vpop.f32.mrb[1].mxu0 }
 0x17a   : > { %v391_v61 = vadd.f32 %v390_v60, %v389_v59 }
 0x17c   : > { %269 = vst.msk [vmem:[%s134_s8] sm:$0xff] %vm268_vm10, %v391_v61 }
 0x17d   : > { %484 = shalt.err (!%p481_p3)
}
 0x17e   : > { %s485_s26 = scalar_lea.hbm %s709_s21, 128  ;;  %s489_s29 = scalar_lea.hbm %s753_s2, 256 }
 0x17f   : > { %p486_p4 = scmp.ne.s32.totalorder %s709_s21, %s485_s26  ;;  %p490_p9 = scmp.lt.u32.totalorder %s709_s21, %s753_s2 }
 0x180   : > { %p491_p10 = scmp.lt.u32.totalorder %s489_s29, %s485_s26  ;;  %p493_p12 = scmp.lt.u32.totalorder %s485_s26, %s709_s21 }
 0x181   : > { %p487_p7 = pnand %p486_p4, %p593_p5 }
 0x182   : > { %p492_p11 = por %p491_p10, %p490_p9 }
 0x183   : > { %p488_p8 = pneg %p487_p7 }
 0x184   : > { %p494_p13 = por %p493_p12, %p492_p11 }
 0x186   : > { %p495_p0 = pnand %p494_p13, %p488_p8 }
 0x188   : > { %498 = shalt.err (!%p495_p0)
}
 0x189   : > { %424 = dma.vmem_to_hbm [thread:$0]  (%p593_p5), %s711_s14, 128, %s709_s21, %s271_s22  }
 0x18a PF: > { %p430_p1 = scmp.ge.s32.totalorder %s533_s12, 2  ;;  %s296_s5 = sand.u32 1, %s521_s9  }
 0x18b   : > { %s297_s3 = scalar_lea.sflag [#allocation3], %s296_s5 }
 0x18c   : > { %p427_p2 = pnand %p430_p1, %p597_p6 }
 0x18e   : > { %516 = dma.done.wait (!%p427_p2), %s297_s3, 128  }
 0x18f   : > { %518 = vsyncadd (!%p427_p2), %s297_s3, 4294967168  ;;  %p12_p3 = scmp.ge.s32.totalorder %s580_s15, 4   ;;  %s756_s9 = smov %s525_s10 }
 0x190   : > { %s757_s10 = smov %s529_s11  ;;  %s758_s11 = smov %s591_s18 }
 0x191   : > { %s759_s12 = smov %s580_s15  ;;  %14 = sbr.rel (!%p12_p3) target bundleno = 3 (0x3), region = 63 }
 0x198   :  { %302 = vsyncpa [#allocation3], 1 }
 0x199   :  { %304 = vsyncpa [#allocation3 + $0x1], 1 }

</bundles_post_ra>
